<compile_context>
chip_gen: v5e
topology: v5e:2x2
jax: 0.10.0
libtpu: 0.0.40
codegen_flags: <defaults>
</compile_context>

<pallas_src>
import functools

import jax
import jax.numpy as jnp
from jax import lax
from jax.experimental import pallas as pl
from jax.experimental.pallas import tpu as pltpu

P_DROP = 0.3
_LANES = 128                                    # TPU lane width (last dim)
_MAX_TILE_ROWS = 2048                           # 2048*128*4B = 1 MiB / block
_DROP_THRESHOLD = int(P_DROP * (1 << 32)) & 0xFFFFFFFF   # keep if bits >= thr
_INV_KEEP = 1.0 / (1.0 - P_DROP)


def _hash_bits(base_u32, draw_id):
    """splitmix32-style finalizer: 32 random bits per element per draw."""
    c = (draw_id * 0x9E3779B9 + 0x7F4A7C15) & 0xFFFFFFFF
    s = base_u32 ^ jnp.uint32(c)
    s = s ^ (s >> 16)
    s = s * jnp.uint32(0x7FEB352D)
    s = s ^ (s >> 15)
    s = s * jnp.uint32(0x846CA68B)
    s = s ^ (s >> 16)
    return s


def _model_kernel(seed_ref, x_ref, o_ref):
    tr, w = x_ref.shape
    row0 = pl.program_id(0) * tr

    # Global element index -> each tile (and each megacore half) gets a
    # distinct, non-overlapping random stream.
    rows = (lax.broadcasted_iota(jnp.int32, (tr, w), 0) + row0).astype(jnp.uint32)
    cols = lax.broadcasted_iota(jnp.int32, (tr, w), 1).astype(jnp.uint32)
    idx = rows * jnp.uint32(w) + cols

    seed = seed_ref[0].astype(jnp.uint32)
    base = idx * jnp.uint32(0x9E3779B9) + seed * jnp.uint32(0x85EBCA6B)

    thr = jnp.uint32(_DROP_THRESHOLD)
    inv_keep = jnp.float32(_INV_KEEP)

    def dropout(v, draw_id):
        # Integer-threshold compare on raw bits + single select (no float
        # uniform, no bool->f32 cast, no extra multiplies).
        keep = _hash_bits(base, draw_id) >= thr
        return jnp.where(keep, v * inv_keep, jnp.float32(0.0))

    x = x_ref[...]
    x1 = dropout(x, 0)
    x2 = x1 + 1.0
    x3 = dropout(x2, 1)
    x4 = x3 + 1.0
    x5 = dropout(x4, 2)
    x6 = x5 + 1.0
    # x7 = rand_like(input): only this draw needs the float conversion.
    x7 = (_hash_bits(base, 3) >> 8).astype(jnp.float32) * jnp.float32(1.0 / (1 << 24))
    # Exact f32 divide (divisor ~1.0); faithful to the reference rounding.
    o_ref[...] = x7 / (x6 - x5)


def _round_up(a, b):
    return (a + b - 1) // b * b


def model_forward(x, seed):
    """x: any-shape float tensor.  seed: i32[1].  Returns f32 tensor like x."""
    orig_shape = x.shape
    xf = jnp.ravel(x).astype(jnp.float32)
    n = xf.shape[0]

    nrows = max(1, -(-n // _LANES))        # ceil(n / 128)
    nrows = _round_up(nrows, 8)            # sublane alignment
    tile_rows = min(_MAX_TILE_ROWS, nrows)
    nrows = _round_up(nrows, tile_rows)    # whole number of tiles
    total = nrows * _LANES
    if total != n:
        xf = jnp.pad(xf, (0, total - n))   # pad value 0 -> divisor is 1, safe
    x2d = xf.reshape(nrows, _LANES)

    out2d = pl.pallas_call(
        _model_kernel,
        out_shape=jax.ShapeDtypeStruct((nrows, _LANES), jnp.float32),
        grid_spec=pltpu.PrefetchScalarGridSpec(
            num_scalar_prefetch=1,
            grid=(nrows // tile_rows,),
            in_specs=[pl.BlockSpec((tile_rows, _LANES), lambda i, seed_ref: (i, 0))],
            out_specs=pl.BlockSpec((tile_rows, _LANES), lambda i, seed_ref: (i, 0)),
        ),
        compiler_params=pltpu.CompilerParams(
            dimension_semantics=("parallel",),
        ),
    )(seed, x2d)

    return out2d.reshape(-1)[:n].reshape(orig_shape)


model_forward_jit = jax.jit(model_forward)


if __name__ == "__main__":
    key = jax.random.PRNGKey(0)
    # Module is pure elementwise; small 4-D example input.
    x = jax.random.normal(key, (2, 4, 16, 16), dtype=jnp.float32)
    seed = jnp.array([42], dtype=jnp.int32)

    out = model_forward_jit(x, seed)
    out = jax.block_until_ready(out)

    assert out.shape == x.shape
    assert out.dtype == jnp.float32
    # For small-magnitude inputs (x5+1)-x5 ~ 1, so out ~ uniform[0,1).
    assert bool(jnp.all(jnp.isfinite(out)))
    assert bool(jnp.all(out >= 0.0))

    print("KERNEL_OK")
</pallas_src>

<mosaic_0001>
module attributes {stable_mosaic.version = 11 : i64} {
  func.func @_model_kernel(%arg0: i32, %arg1: memref<1xi32, #tpu.memory_space<smem>>, %arg2: memref<16x128xf32, #tpu.memory_space<vmem>>, %arg3: memref<16x128xf32, #tpu.memory_space<vmem>>) attributes {dimension_semantics = [#tpu.dimension_semantics<parallel>], iteration_bounds = array<i64: 1>, scalar_prefetch = 1 : i64, scratch_operands = 0 : i64, tpu.core_type = #tpu.core_type<tc>, window_params = [{transform_indices = @transform_0, window_bounds = array<i64: 16, 128>}, {transform_indices = @transform_1, window_bounds = array<i64: 16, 128>}]} {
    %c16_i32 = arith.constant 16 : i32
    %0 = arith.muli %arg0, %c16_i32 : i32
    %1 = tpu.iota {dimensions = array<i32: 0>} : vector<16x128xi32>
    %2 = vector.broadcast %0 : i32 to vector<16x128xi32>
    %3 = arith.addi %1, %2 : vector<16x128xi32>
    %4 = tpu.iota {dimensions = array<i32: 1>} : vector<16x128xi32>
    %c128_i32 = arith.constant 128 : i32
    %5 = vector.broadcast %c128_i32 : i32 to vector<16x128xi32>
    %6 = arith.muli %3, %5 : vector<16x128xi32>
    %7 = arith.addi %6, %4 : vector<16x128xi32>
    %c0 = arith.constant 0 : index
    %8 = memref.load %arg1[%c0] : memref<1xi32, #tpu.memory_space<smem>>
    %c-1640531527_i32 = arith.constant -1640531527 : i32
    %9 = vector.broadcast %c-1640531527_i32 : i32 to vector<16x128xi32>
    %10 = arith.muli %7, %9 : vector<16x128xi32>
    %c-2048144789_i32 = arith.constant -2048144789 : i32
    %11 = arith.muli %8, %c-2048144789_i32 : i32
    %12 = vector.broadcast %11 : i32 to vector<16x128xi32>
    %13 = arith.addi %10, %12 : vector<16x128xi32>
    %c0_0 = arith.constant 0 : index
    %c0_1 = arith.constant 0 : index
    %14 = vector.load %arg2[%c0_0, %c0_1] : memref<16x128xf32, #tpu.memory_space<vmem>>, vector<16x128xf32>
    %c2135587861_i32 = arith.constant 2135587861 : i32
    %15 = vector.broadcast %c2135587861_i32 : i32 to vector<16x128xi32>
    %16 = arith.xori %13, %15 : vector<16x128xi32>
    %c16_i32_2 = arith.constant 16 : i32
    %17 = vector.broadcast %c16_i32_2 : i32 to vector<16x128xi32>
    %18 = arith.shrui %16, %17 : vector<16x128xi32>
    %19 = arith.xori %16, %18 : vector<16x128xi32>
    %c2146121005_i32 = arith.constant 2146121005 : i32
    %20 = vector.broadcast %c2146121005_i32 : i32 to vector<16x128xi32>
    %21 = arith.muli %19, %20 : vector<16x128xi32>
    %c15_i32 = arith.constant 15 : i32
    %22 = vector.broadcast %c15_i32 : i32 to vector<16x128xi32>
    %23 = arith.shrui %21, %22 : vector<16x128xi32>
    %24 = arith.xori %21, %23 : vector<16x128xi32>
    %c-2073254261_i32 = arith.constant -2073254261 : i32
    %25 = vector.broadcast %c-2073254261_i32 : i32 to vector<16x128xi32>
    %26 = arith.muli %24, %25 : vector<16x128xi32>
    %c16_i32_3 = arith.constant 16 : i32
    %27 = vector.broadcast %c16_i32_3 : i32 to vector<16x128xi32>
    %28 = arith.shrui %26, %27 : vector<16x128xi32>
    %29 = arith.xori %26, %28 : vector<16x128xi32>
    %c1288490188_i32 = arith.constant 1288490188 : i32
    %30 = vector.broadcast %c1288490188_i32 : i32 to vector<16x128xi32>
    %31 = arith.cmpi uge, %29, %30 : vector<16x128xi32>
    %cst = arith.constant 1.42857146 : f32
    %32 = vector.broadcast %cst : f32 to vector<16x128xf32>
    %33 = arith.mulf %14, %32 : vector<16x128xf32>
    %cst_4 = arith.constant 0.000000e+00 : f32
    %34 = vector.broadcast %cst_4 : f32 to vector<16x128xf32>
    %35 = arith.select %31, %33, %34 : vector<16x128xi1>, vector<16x128xf32>
    %cst_5 = arith.constant 1.000000e+00 : f32
    %36 = vector.broadcast %cst_5 : f32 to vector<16x128xf32>
    %37 = arith.addf %35, %36 : vector<16x128xf32>
    %c495056334_i32 = arith.constant 495056334 : i32
    %38 = vector.broadcast %c495056334_i32 : i32 to vector<16x128xi32>
    %39 = arith.xori %13, %38 : vector<16x128xi32>
    %c16_i32_6 = arith.constant 16 : i32
    %40 = vector.broadcast %c16_i32_6 : i32 to vector<16x128xi32>
    %41 = arith.shrui %39, %40 : vector<16x128xi32>
    %42 = arith.xori %39, %41 : vector<16x128xi32>
    %c2146121005_i32_7 = arith.constant 2146121005 : i32
    %43 = vector.broadcast %c2146121005_i32_7 : i32 to vector<16x128xi32>
    %44 = arith.muli %42, %43 : vector<16x128xi32>
    %c15_i32_8 = arith.constant 15 : i32
    %45 = vector.broadcast %c15_i32_8 : i32 to vector<16x128xi32>
    %46 = arith.shrui %44, %45 : vector<16x128xi32>
    %47 = arith.xori %44, %46 : vector<16x128xi32>
    %c-2073254261_i32_9 = arith.constant -2073254261 : i32
    %48 = vector.broadcast %c-2073254261_i32_9 : i32 to vector<16x128xi32>
    %49 = arith.muli %47, %48 : vector<16x128xi32>
    %c16_i32_10 = arith.constant 16 : i32
    %50 = vector.broadcast %c16_i32_10 : i32 to vector<16x128xi32>
    %51 = arith.shrui %49, %50 : vector<16x128xi32>
    %52 = arith.xori %49, %51 : vector<16x128xi32>
    %c1288490188_i32_11 = arith.constant 1288490188 : i32
    %53 = vector.broadcast %c1288490188_i32_11 : i32 to vector<16x128xi32>
    %54 = arith.cmpi uge, %52, %53 : vector<16x128xi32>
    %cst_12 = arith.constant 1.42857146 : f32
    %55 = vector.broadcast %cst_12 : f32 to vector<16x128xf32>
    %56 = arith.mulf %37, %55 : vector<16x128xf32>
    %cst_13 = arith.constant 0.000000e+00 : f32
    %57 = vector.broadcast %cst_13 : f32 to vector<16x128xf32>
    %58 = arith.select %54, %56, %57 : vector<16x128xi1>, vector<16x128xf32>
    %cst_14 = arith.constant 1.000000e+00 : f32
    %59 = vector.broadcast %cst_14 : f32 to vector<16x128xf32>
    %60 = arith.addf %58, %59 : vector<16x128xf32>
    %c-1145475193_i32 = arith.constant -1145475193 : i32
    %61 = vector.broadcast %c-1145475193_i32 : i32 to vector<16x128xi32>
    %62 = arith.xori %13, %61 : vector<16x128xi32>
    %c16_i32_15 = arith.constant 16 : i32
    %63 = vector.broadcast %c16_i32_15 : i32 to vector<16x128xi32>
    %64 = arith.shrui %62, %63 : vector<16x128xi32>
    %65 = arith.xori %62, %64 : vector<16x128xi32>
    %c2146121005_i32_16 = arith.constant 2146121005 : i32
    %66 = vector.broadcast %c2146121005_i32_16 : i32 to vector<16x128xi32>
    %67 = arith.muli %65, %66 : vector<16x128xi32>
    %c15_i32_17 = arith.constant 15 : i32
    %68 = vector.broadcast %c15_i32_17 : i32 to vector<16x128xi32>
    %69 = arith.shrui %67, %68 : vector<16x128xi32>
    %70 = arith.xori %67, %69 : vector<16x128xi32>
    %c-2073254261_i32_18 = arith.constant -2073254261 : i32
    %71 = vector.broadcast %c-2073254261_i32_18 : i32 to vector<16x128xi32>
    %72 = arith.muli %70, %71 : vector<16x128xi32>
    %c16_i32_19 = arith.constant 16 : i32
    %73 = vector.broadcast %c16_i32_19 : i32 to vector<16x128xi32>
    %74 = arith.shrui %72, %73 : vector<16x128xi32>
    %75 = arith.xori %72, %74 : vector<16x128xi32>
    %c1288490188_i32_20 = arith.constant 1288490188 : i32
    %76 = vector.broadcast %c1288490188_i32_20 : i32 to vector<16x128xi32>
    %77 = arith.cmpi uge, %75, %76 : vector<16x128xi32>
    %cst_21 = arith.constant 1.42857146 : f32
    %78 = vector.broadcast %cst_21 : f32 to vector<16x128xf32>
    %79 = arith.mulf %60, %78 : vector<16x128xf32>
    %cst_22 = arith.constant 0.000000e+00 : f32
    %80 = vector.broadcast %cst_22 : f32 to vector<16x128xf32>
    %81 = arith.select %77, %79, %80 : vector<16x128xi1>, vector<16x128xf32>
    %cst_23 = arith.constant 1.000000e+00 : f32
    %82 = vector.broadcast %cst_23 : f32 to vector<16x128xf32>
    %83 = arith.addf %81, %82 : vector<16x128xf32>
    %c1508960576_i32 = arith.constant 1508960576 : i32
    %84 = vector.broadcast %c1508960576_i32 : i32 to vector<16x128xi32>
    %85 = arith.xori %13, %84 : vector<16x128xi32>
    %c16_i32_24 = arith.constant 16 : i32
    %86 = vector.broadcast %c16_i32_24 : i32 to vector<16x128xi32>
    %87 = arith.shrui %85, %86 : vector<16x128xi32>
    %88 = arith.xori %85, %87 : vector<16x128xi32>
    %c2146121005_i32_25 = arith.constant 2146121005 : i32
    %89 = vector.broadcast %c2146121005_i32_25 : i32 to vector<16x128xi32>
    %90 = arith.muli %88, %89 : vector<16x128xi32>
    %c15_i32_26 = arith.constant 15 : i32
    %91 = vector.broadcast %c15_i32_26 : i32 to vector<16x128xi32>
    %92 = arith.shrui %90, %91 : vector<16x128xi32>
    %93 = arith.xori %90, %92 : vector<16x128xi32>
    %c-2073254261_i32_27 = arith.constant -2073254261 : i32
    %94 = vector.broadcast %c-2073254261_i32_27 : i32 to vector<16x128xi32>
    %95 = arith.muli %93, %94 : vector<16x128xi32>
    %c16_i32_28 = arith.constant 16 : i32
    %96 = vector.broadcast %c16_i32_28 : i32 to vector<16x128xi32>
    %97 = arith.shrui %95, %96 : vector<16x128xi32>
    %98 = arith.xori %95, %97 : vector<16x128xi32>
    %c8_i32 = arith.constant 8 : i32
    %99 = vector.broadcast %c8_i32 : i32 to vector<16x128xi32>
    %100 = arith.shrui %98, %99 : vector<16x128xi32>
    %101 = arith.uitofp %100 : vector<16x128xi32> to vector<16x128xf32>
    %cst_29 = arith.constant 5.96046448E-8 : f32
    %102 = vector.broadcast %cst_29 : f32 to vector<16x128xf32>
    %103 = arith.mulf %101, %102 : vector<16x128xf32>
    %104 = arith.subf %83, %81 : vector<16x128xf32>
    %105 = arith.divf %103, %104 : vector<16x128xf32>
    %c0_30 = arith.constant 0 : index
    %c0_31 = arith.constant 0 : index
    %106 = vector.load %arg3[%c0_30, %c0_31] : memref<16x128xf32, #tpu.memory_space<vmem>>, vector<16x128xf32>
    tpu.vector_store %arg3[%c0_30, %c0_31], %105 {strides = array<i32>} : memref<16x128xf32, #tpu.memory_space<vmem>>, vector<16x128xf32>,
    return
  }
  func.func @transform_0(%arg0: i32, %arg1: memref<1xi32, #tpu.memory_space<smem>>) -> (i32, i32) {
    %c0_i32 = arith.constant 0 : i32
    %c0_i32_0 = arith.constant 0 : i32
    return %arg0, %c0_i32 : i32, i32
  }
  func.func @transform_1(%arg0: i32, %arg1: memref<1xi32, #tpu.memory_space<smem>>) -> (i32, i32) {
    %c0_i32 = arith.constant 0 : i32
    %c0_i32_0 = arith.constant 0 : i32
    return %arg0, %c0_i32 : i32, i32
  }
}

</mosaic_0001>

<bundles_post_ra>
// kernel: model_forward.1
= control target key start
LH: loop header
LB: loop body
LE: loop exit
PB: predicated region body
PF: predicated region fallthrough
CT: control target
= control target key end

     0   :  { %v11_v0 = vlaneseq  ;;  %s234_s0 = inlined_call_operand.<no memory space> [shape: s32[1], index: 0, kind: input, shape index: {}]   ;;  %s235_s1 = inlined_call_operand.vmem [shape: f32[16,128], index: 1, kind: input, shape index: {}]   ;;  %s236_s2 = inlined_call_operand.vmem [shape: f32[16,128], index: 2, kind: output, shape index: {}]  }
   0x1   :  { %s26_s11 = smul.u32 2246822507, %s234_s0  ;;  %v30_v61 = vld [vmem:[%s235_s1] sm:$0xff] }
   0x2   :  { %v12_v1 = vshrl.u32 %v11_v0, 7  ;;  %v18_v2 = vand.u32 127, %v11_v0 }
   0x3   :  { %v27_v7 = vstv %s26_s11 }
   0x4   :  { %v13_v3 = vadd.s32 8, %v12_v1  ;;  %v19_v4 = vmul.u32 128, %v12_v1 }
   0x6   :  { %v20_v5 = vmul.u32 128, %v13_v3  ;;  %v21_v6 = vadd.s32 %v19_v4, %v18_v2 }
   0x8   :  { %v22_v8 = vadd.s32 %v20_v5, %v18_v2  ;;  %v24_v9 = vmul.u32 2654435769, %v21_v6 }
   0xa   :  { %v25_v10 = vmul.u32 2654435769, %v22_v8  ;;  %v28_v11 = vadd.s32 %v27_v7, %v24_v9  ;;  %v31_v8 = vld [vmem:[%s235_s1 + $0x8] sm:$0xff] }
   0xc   :  { %v29_v12 = vadd.s32 %v27_v7, %v25_v10  ;;  %v32_v13 = vxor.u32 2135587861, %v28_v11  ;;  %v62_v14 = vxor.u32 495056334, %v28_v11  ;;  %v92_v15 = vxor.u32 3149492103, %v28_v11 }
   0xd   :  { %v122_v16 = vxor.u32 1508960576, %v28_v11 }
   0xe   :  { %v33_v17 = vxor.u32 2135587861, %v29_v12  ;;  %v34_v18 = vshrl.u32 %v32_v13, 16  ;;  %v63_v19 = vxor.u32 495056334, %v29_v12  ;;  %v64_v20 = vshrl.u32 %v62_v14, 16 }
   0xf   :  { %v93_v21 = vxor.u32 3149492103, %v29_v12  ;;  %v94_v22 = vshrl.u32 %v92_v15, 16  ;;  %v123_v23 = vxor.u32 1508960576, %v29_v12  ;;  %v124_v24 = vshrl.u32 %v122_v16, 16 }
  0x10   :  { %v35_v25 = vshrl.u32 %v33_v17, 16  ;;  %v36_v26 = vxor.u32 %v34_v18, %v32_v13  ;;  %v65_v27 = vshrl.u32 %v63_v19, 16  ;;  %v66_v28 = vxor.u32 %v64_v20, %v62_v14 }
  0x11   :  { %v95_v29 = vshrl.u32 %v93_v21, 16  ;;  %v96_v30 = vxor.u32 %v94_v22, %v92_v15  ;;  %v125_v31 = vshrl.u32 %v123_v23, 16  ;;  %v126_v32 = vxor.u32 %v124_v24, %v122_v16 }
  0x12   :  { %v37_v33 = vxor.u32 %v35_v25, %v33_v17  ;;  %v38_v34 = vmul.u32 2146121005, %v36_v26  ;;  %v67_v35 = vxor.u32 %v65_v27, %v63_v19  ;;  %v68_v36 = vmul.u32 2146121005, %v66_v28 }
  0x13   :  { %v97_v37 = vxor.u32 %v95_v29, %v93_v21  ;;  %v98_v38 = vmul.u32 2146121005, %v96_v30  ;;  %v127_v39 = vxor.u32 %v125_v31, %v123_v23  ;;  %v128_v40 = vmul.u32 2146121005, %v126_v32 }
  0x14   :  { %v39_v41 = vmul.u32 2146121005, %v37_v33  ;;  %v40_v42 = vshrl.u32 %v38_v34, 15  ;;  %v69_v43 = vmul.u32 2146121005, %v67_v35  ;;  %v70_v44 = vshrl.u32 %v68_v36, 15 }
  0x15   :  { %v99_v45 = vmul.u32 2146121005, %v97_v37  ;;  %v100_v46 = vshrl.u32 %v98_v38, 15  ;;  %v129_v47 = vmul.u32 2146121005, %v127_v39  ;;  %v130_v48 = vshrl.u32 %v128_v40, 15 }
  0x16   :  { %v41_v49 = vshrl.u32 %v39_v41, 15  ;;  %v42_v50 = vxor.u32 %v40_v42, %v38_v34  ;;  %v71_v51 = vshrl.u32 %v69_v43, 15  ;;  %v72_v52 = vxor.u32 %v70_v44, %v68_v36 }
  0x17   :  { %v101_v53 = vshrl.u32 %v99_v45, 15  ;;  %v102_v54 = vxor.u32 %v100_v46, %v98_v38  ;;  %v131_v55 = vshrl.u32 %v129_v47, 15  ;;  %v132_v56 = vxor.u32 %v130_v48, %v128_v40 }
  0x18   :  { %v43_v57 = vxor.u32 %v41_v49, %v39_v41  ;;  %v44_v58 = vmul.u32 2221713035, %v42_v50  ;;  %v73_v59 = vxor.u32 %v71_v51, %v69_v43  ;;  %v74_v60 = vmul.u32 2221713035, %v72_v52 }
  0x19   :  { %v103_v62 = vxor.u32 %v101_v53, %v99_v45  ;;  %v104_v63 = vmul.u32 2221713035, %v102_v54  ;;  %v133_v0 = vxor.u32 %v131_v55, %v129_v47  ;;  %v134_v7 = vmul.u32 2221713035, %v132_v56 }
  0x1a   :  { %v45_v1 = vmul.u32 2221713035, %v43_v57  ;;  %v46_v2 = vshrl.u32 %v44_v58, 16  ;;  %v75_v3 = vmul.u32 2221713035, %v73_v59  ;;  %v76_v4 = vshrl.u32 %v74_v60, 16 }
  0x1b   :  { %v105_v5 = vmul.u32 2221713035, %v103_v62  ;;  %v106_v6 = vshrl.u32 %v104_v63, 16  ;;  %v56_v13 = vmul.f32 1.4285715, %v30_v61  ;;  %v136_v23 = vshrl.u32 %v134_v7, 16 }
  0x1c   :  { %v47_v9 = vshrl.u32 %v45_v1, 16  ;;  %v48_v10 = vxor.u32 %v46_v2, %v44_v58  ;;  %v77_v11 = vshrl.u32 %v75_v3, 16  ;;  %v78_v12 = vxor.u32 %v76_v4, %v74_v60 }
  0x1d   :  { %v135_v14 = vmul.u32 2221713035, %v133_v0  ;;  %v107_v18 = vshrl.u32 %v105_v5, 16  ;;  %v57_v19 = vmul.f32 1.4285715, %v31_v8  ;;  %v108_v22 = vxor.u32 %v106_v6, %v104_v63 }
  0x1e   :  { %v49_v15 = vxor.u32 %v47_v9, %v45_v1  ;;  %v194_v16 = vxor.u32 2147483648, %v48_v10  ;;  %v79_v17 = vxor.u32 %v77_v11, %v75_v3  ;;  %v196_v20 = vxor.u32 2147483648, %v78_v12 }
  0x1f   :  { %v109_v27 = vxor.u32 %v107_v18, %v105_v5  ;;  %v137_v28 = vshrl.u32 %v135_v14, 16  ;;  %v198_v32 = vxor.u32 2147483648, %v108_v22  ;;  %v138_v33 = vxor.u32 %v136_v23, %v134_v7 }
  0x20   :  { %vm52_vm0 = vcmp.ge.s32.totalorder %v194_v16, 3435973836  ;;  %v195_v21 = vxor.u32 2147483648, %v49_v15  ;;  %v197_v25 = vxor.u32 2147483648, %v79_v17  ;;  %vm82_vm2 = vcmp.ge.s32.totalorder %v196_v20, 3435973836 }
  0x21   :  { %v58_v24 = vsel %vm52_vm0, %v56_v13, 0.0  ;;  %v199_v36 = vxor.u32 2147483648, %v109_v27  ;;  %v139_v37 = vxor.u32 %v137_v28, %v135_v14  ;;  %vm112_vm4 = vcmp.ge.s32.totalorder %v198_v32, 3435973836 }
  0x22   :  { %vm55_vm1 = vcmp.ge.s32.totalorder %v195_v21, 3435973836  ;;  %v60_v26 = vadd.f32 1.0, %v58_v24  ;;  %vm85_vm3 = vcmp.ge.s32.totalorder %v197_v25, 3435973836  ;;  %v140_v40 = vshrl.u32 %v138_v33, 8 }
  0x23   :  { %v59_v29 = vsel %vm55_vm1, %v57_v19, 0.0  ;;  %vm115_vm5 = vcmp.ge.s32.totalorder %v199_v36, 3435973836  ;;  %v141_v43 = vshrl.u32 %v139_v37, 8 }
  0x24   :  { %v61_v30 = vadd.f32 1.0, %v59_v29  ;;  %v86_v31 = vmul.f32 1.4285715, %v60_v26  ;;  %v142_v47 = vshrl.u32 %v140_v40, 16  ;;  %v143_v52 = vand.u32 65535, %v140_v40 }
  0x25   :  { %v148_v50 = vshrl.u32 %v141_v43, 16  ;;  %v149_v55 = vand.u32 65535, %v141_v43 }
  0x26   :  { %v87_v34 = vmul.f32 1.4285715, %v61_v30  ;;  %v88_v35 = vsel %vm82_vm2, %v86_v31, 0.0  ;;  %v144_v53 = vcvt.s32.f32 %v142_v47  ;;  %v146_v58 = vcvt.s32.f32 %v143_v52 }
  0x27   :  { %v90_v38 = vadd.f32 1.0, %v88_v35  ;;  %v150_v56 = vcvt.s32.f32 %v148_v50  ;;  %v152_v61 = vcvt.s32.f32 %v149_v55 }
  0x28   :  { %v89_v39 = vsel %vm85_vm3, %v87_v34, 0.0  ;;  %v145_v57 = vmul.f32 65536.0, %v144_v53 }
  0x29   :  { %v91_v41 = vadd.f32 1.0, %v89_v39  ;;  %v116_v42 = vmul.f32 1.4285715, %v90_v38  ;;  %v151_v60 = vmul.f32 65536.0, %v150_v56 }
  0x2a   :  { %v147_v0 = vadd.f32 %v146_v58, %v145_v57 }
  0x2b   :  { %v117_v44 = vmul.f32 1.4285715, %v91_v41  ;;  %v118_v45 = vsel %vm112_vm4, %v116_v42, 0.0  ;;  %v153_v5 = vadd.f32 %v152_v61, %v151_v60 }
  0x2c   :  { %v120_v46 = vadd.f32 1.0, %v118_v45  ;;  %v154_v11 = vmul.f32 5.9604645e-08, %v147_v0 }
  0x2d   :  { %v119_v48 = vsel %vm115_vm5, %v117_v44, 0.0  ;;  %v155_v15 = vmul.f32 5.9604645e-08, %v153_v5 }
  0x2e   :  { %v121_v49 = vadd.f32 1.0, %v119_v48  ;;  %v156_v51 = vsub.f32 %v120_v46, %v118_v45 }
  0x30   :  { %v157_v54 = vsub.f32 %v121_v49, %v119_v48  ;;  %200 = vrcp.f32 %v156_v51  ;;  %vm163_vm6 = vweird.f32 %v156_v51  ;;  %v169_v1 = vand.u32 2147483648, %v156_v51 }
  0x31   :  { %v167_v3 = vand.u32 2147483647, %v156_v51 }
  0x32   :  { %202 = vrcp.f32 %v157_v54  ;;  %vm178_vm8 = vweird.f32 %v157_v54  ;;  %v184_v6 = vand.u32 2147483648, %v157_v54  ;;  %v182_v9 = vand.u32 2147483647, %v157_v54 }
  0x33   :  { %v170_v10 = vor.u32 1.1754944e-38, %v169_v1  ;;  %vm168_vm11 = vcmp.eq.f32.partialorder %v167_v3, 8.507059e+37 }
  0x34   :  { %v185_v14 = vor.u32 1.1754944e-38, %v184_v6  ;;  %vm183_vm13 = vcmp.eq.f32.partialorder %v182_v9, 8.507059e+37 }
  0x36   :  { %v201_v59 = vpop.eup %200 }
  0x37   :  { %v159_v62 = vmul.f32 %v201_v59, %v156_v51  ;;  %vm164_vm7 = vweird.f32 %v201_v59 }
  0x38   :  { %v203_v63 = vpop.eup %202  ;;  %vm165_vm10 = vmor %vm163_vm6, %vm164_vm7 }
  0x39   :  { %v160_v2 = vsub.f32 1.0, %v159_v62  ;;  %v174_v4 = vmul.f32 %v203_v63, %v157_v54  ;;  %vm179_vm9 = vweird.f32 %v203_v63 }
  0x3a   :  { %vm180_vm12 = vmor %vm178_vm8, %vm179_vm9 }
  0x3b   :  { %v161_v7 = vmul.f32 %v201_v59, %v160_v2  ;;  %v175_v8 = vsub.f32 1.0, %v174_v4 }
  0x3d   :  { %v162_v12 = vadd.f32 %v201_v59, %v161_v7  ;;  %v176_v13 = vmul.f32 %v203_v63, %v175_v8 }
  0x3f   :  { %v166_v16 = vsel %vm165_vm10, %v201_v59, %v162_v12  ;;  %v177_v17 = vadd.f32 %v203_v63, %v176_v13 }
  0x40   :  { %v171_v18 = vsel %vm168_vm11, %v170_v10, %v166_v16 }
  0x41   :  { %v172_v19 = vmul.f32 %v171_v18, %v154_v11  ;;  %v181_v20 = vsel %vm180_vm12, %v203_v63, %v177_v17 }
  0x42   :  { %v186_v21 = vsel %vm183_vm13, %v185_v14, %v181_v20 }
  0x43   :  { %v187_v22 = vmul.f32 %v186_v21, %v155_v15  ;;  %188 = vst [vmem:[%s236_s2] sm:$0xff] %v172_v19 }
  0x45   :  { %189 = vst [vmem:[%s236_s2 + $0x8] sm:$0xff] %v187_v22 }

</bundles_post_ra>
